<compile_context>
chip_gen: v5e
topology: v5e:2x2
jax: 0.10.0
libtpu: 0.0.40
codegen_flags: <defaults>
</compile_context>

<pallas_src>
import functools
import math

import jax
import jax.numpy as jnp
from jax.experimental import pallas as pl
from jax.experimental.pallas import tpu as pltpu


_MASK_VALUE = -1e30   # finite "minus infinity": never produces NaN on padded rows


def _round_up(n, m):
    return ((n + m - 1) // m) * m


def _prod(xs):
    out = 1
    for v in xs:
        out *= int(v)
    return out


@functools.lru_cache(maxsize=1)
def _vmem_limit_bytes():
    """~3/4 of physical VMEM (about 48 MiB on v7x, 96 MiB on v5e/v6e)."""
    try:
        cap = int(pltpu.get_tpu_info().vmem_capacity_bytes)
    except Exception:
        cap = 128 << 20
    return int(min((cap * 3) // 4, 96 << 20))


# ---------------------------------------------------------------------------
# Linear: y = [LayerNorm](x) @ W (+ b) (+ residual), tiled over (rows, out cols)
# ---------------------------------------------------------------------------
def _linear_kernel(*refs, has_ln, has_bias, has_res, eps):
    it = iter(refs)
    x_ref = next(it)
    scale_ref = next(it) if has_ln else None
    shift_ref = next(it) if has_ln else None
    w_ref = next(it)
    b_ref = next(it) if has_bias else None
    r_ref = next(it) if has_res else None
    o_ref = next(it)

    x = x_ref[...].astype(jnp.float32)
    if has_ln:
        mean = jnp.mean(x, axis=-1, keepdims=True)
        var = jnp.mean((x - mean) * (x - mean), axis=-1, keepdims=True)  # unbiased=False
        x = scale_ref[...] * ((x - mean) * jax.lax.rsqrt(var + eps)) + shift_ref[...]

    # bf16 MXU operands, f32 accumulation.
    acc = jnp.dot(x.astype(jnp.bfloat16), w_ref[...].astype(jnp.bfloat16),
                  preferred_element_type=jnp.float32)
    if has_bias:
        acc = acc + b_ref[...]
    if has_res:
        acc = acc + r_ref[...].astype(jnp.float32)
    o_ref[...] = acc.astype(o_ref.dtype)


def linear(x, w, b=None, *, ln_scale=None, ln_shift=None, residual=None,
           eps=1e-5, tm=256, tn=512):
    """x: (..., K), w: (K, N), b: (N,) or None, residual: (..., N) -> (..., N).

    Optionally applies LayerNorm(x) before the matmul and adds a residual in
    the epilogue (both fused, no extra HBM passes)."""
    lead, K = x.shape[:-1], x.shape[-1]
    N = w.shape[1]
    M = _prod(lead)
    x2d = x.reshape(M, K)
    has_ln = ln_scale is not None
    has_bias = b is not None
    has_res = residual is not None

    tm_eff = min(tm, _round_up(M, 8))
    tn_eff = min(tn, _round_up(N, 128))       # lane-dense output tiles
    M_pad = _round_up(M, tm_eff)
    N_pad = _round_up(N, tn_eff)

    if M_pad != M:
        x2d = jnp.pad(x2d, ((0, M_pad - M), (0, 0)))
    if N_pad != N:
        w = jnp.pad(w, ((0, 0), (0, N_pad - N)))
        if has_bias:
            b = jnp.pad(b, (0, N_pad - N))

    args = [x2d]
    in_specs = [pl.BlockSpec((tm_eff, K), lambda i, j: (i, 0))]
    if has_ln:
        args += [ln_scale.reshape(1, K), ln_shift.reshape(1, K)]
        in_specs += [pl.BlockSpec((1, K), lambda i, j: (0, 0)),
                     pl.BlockSpec((1, K), lambda i, j: (0, 0))]
    args.append(w)
    in_specs.append(pl.BlockSpec((K, tn_eff), lambda i, j: (0, j)))
    if has_bias:
        args.append(b.reshape(1, N_pad))
        in_specs.append(pl.BlockSpec((1, tn_eff), lambda i, j: (0, j)))
    if has_res:
        r2d = residual.reshape(M, N)
        if M_pad != M or N_pad != N:
            r2d = jnp.pad(r2d, ((0, M_pad - M), (0, N_pad - N)))
        args.append(r2d)
        in_specs.append(pl.BlockSpec((tm_eff, tn_eff), lambda i, j: (i, j)))

    kernel = functools.partial(_linear_kernel, has_ln=has_ln,
                               has_bias=has_bias, has_res=has_res, eps=eps)
    cost = pl.CostEstimate(
        flops=2 * M_pad * K * N_pad,
        transcendentals=0,
        bytes_accessed=4 * (M_pad * K + K * N_pad + M_pad * N_pad),
    )
    out = pl.pallas_call(
        kernel,
        out_shape=jax.ShapeDtypeStruct((M_pad, N_pad), x.dtype),
        grid_spec=pltpu.PrefetchScalarGridSpec(
            num_scalar_prefetch=0,
            grid=(M_pad // tm_eff, N_pad // tn_eff),
            in_specs=in_specs,
            out_specs=pl.BlockSpec((tm_eff, tn_eff), lambda i, j: (i, j)),
        ),
        compiler_params=pltpu.CompilerParams(
            dimension_semantics=("parallel", "parallel"),
            vmem_limit_bytes=_vmem_limit_bytes()),
        cost_estimate=cost,
    )(*args)
    return out[:M, :N].reshape(*lead, N)


# ---------------------------------------------------------------------------
# Fused FFN: LayerNorm -> Linear(D->H) -> tanh-GELU -> Linear(H->D) -> + x
# ---------------------------------------------------------------------------
def _ffn_kernel(x_ref, scale_ref, shift_ref, w1_ref, b1_ref, w2_ref, b2_ref,
                o_ref, xn_ref, acc_ref, *, eps):
    h_idx = pl.program_id(1)

    @pl.when(h_idx == 0)
    def _():
        x = x_ref[...].astype(jnp.float32)
        mean = jnp.mean(x, axis=-1, keepdims=True)
        var = jnp.mean((x - mean) * (x - mean), axis=-1, keepdims=True)
        xn = scale_ref[...] * ((x - mean) * jax.lax.rsqrt(var + eps)) + shift_ref[...]
        xn_ref[...] = xn.astype(jnp.bfloat16)     # cached bf16 MXU operand
        acc_ref[...] = jnp.zeros_like(acc_ref)

    # Linear 1 (this H tile): bf16 operands, f32 MXU accumulation.
    h = jnp.dot(xn_ref[...], w1_ref[...].astype(jnp.bfloat16),
                preferred_element_type=jnp.float32) + b1_ref[...]

    # tanh-GELU: h * (0.5 + 0.5*tanh(c*h*(1 + k*h^2))); tanh runs on the EUP.
    c = 0.7978845608028654   # sqrt(2/pi)
    kc = 0.044715
    g = h * (0.5 + 0.5 * jnp.tanh(c * h * (1.0 + kc * h * h)))

    # Linear 2 partial sum over this H tile, f32 VMEM accumulator.
    acc_ref[...] += jnp.dot(g.astype(jnp.bfloat16), w2_ref[...].astype(jnp.bfloat16),
                            preferred_element_type=jnp.float32)

    @pl.when(h_idx == pl.num_programs(1) - 1)
    def _():
        # Fused bias + residual (pre-LN x) epilogue.
        o_ref[...] = (acc_ref[...] + b2_ref[...]
                      + x_ref[...].astype(jnp.float32)).astype(o_ref.dtype)


def feed_forward(x, ln_scale, ln_shift, w1, b1, w2, b2, *, eps=1e-5, tm=256, th=512):
    """Fused LN2 -> FFN -> residual.  grid = (row tiles, hidden tiles); H is a
    reduction axis for the second matmul, so weight VMEM stays bounded."""
    lead, D = x.shape[:-1], x.shape[-1]
    H = w1.shape[1]
    M = _prod(lead)
    x2d = x.reshape(M, D)

    tm_eff = min(tm, _round_up(M, 8))
    th_eff = min(th, _round_up(H, 128))
    M_pad = _round_up(M, tm_eff)
    H_pad = _round_up(H, th_eff)

    if M_pad != M:
        x2d = jnp.pad(x2d, ((0, M_pad - M), (0, 0)))
    if H_pad != H:
        # Zero padding is exact: GELU(0)=0 and the padded w2 rows are zero.
        w1 = jnp.pad(w1, ((0, 0), (0, H_pad - H)))
        b1 = jnp.pad(b1, (0, H_pad - H))
        w2 = jnp.pad(w2, ((0, H_pad - H), (0, 0)))

    cost = pl.CostEstimate(
        flops=4 * M_pad * D * H_pad,
        transcendentals=M_pad * H_pad,
        bytes_accessed=4 * (2 * M_pad * D + 2 * D * H_pad + H_pad + D),
    )
    out = pl.pallas_call(
        functools.partial(_ffn_kernel, eps=eps),
        out_shape=jax.ShapeDtypeStruct((M_pad, D), x.dtype),
        grid_spec=pltpu.PrefetchScalarGridSpec(
            num_scalar_prefetch=0,
            grid=(M_pad // tm_eff, H_pad // th_eff),
            in_specs=[
                pl.BlockSpec((tm_eff, D), lambda i, j: (i, 0)),   # x rows (also residual)
                pl.BlockSpec((1, D), lambda i, j: (0, 0)),        # ln scale
                pl.BlockSpec((1, D), lambda i, j: (0, 0)),        # ln shift
                pl.BlockSpec((D, th_eff), lambda i, j: (0, j)),   # w1 H-tile
                pl.BlockSpec((1, th_eff), lambda i, j: (0, j)),   # b1 H-tile
                pl.BlockSpec((th_eff, D), lambda i, j: (j, 0)),   # w2 H-tile
                pl.BlockSpec((1, D), lambda i, j: (0, 0)),        # b2
            ],
            out_specs=pl.BlockSpec((tm_eff, D), lambda i, j: (i, 0)),
            scratch_shapes=[
                pltpu.VMEM((tm_eff, D), jnp.bfloat16),   # cached LN(x)
                pltpu.VMEM((tm_eff, D), jnp.float32),    # f32 accumulator
            ],
        ),
        compiler_params=pltpu.CompilerParams(
            dimension_semantics=("parallel", "arbitrary"),
            vmem_limit_bytes=_vmem_limit_bytes()),
        cost_estimate=cost,
    )(x2d, ln_scale.reshape(1, D), ln_shift.reshape(1, D), w1,
      b1.reshape(1, H_pad), w2, b2.reshape(1, D))
    return out[:M].reshape(*lead, D)


# ---------------------------------------------------------------------------
# Flash-style causal multi-head attention on the packed (B, S, D) layout
# ---------------------------------------------------------------------------
def _flash_attn_kernel(q_ref, k_ref, v_ref, o_ref, acc_ref, m_ref, l_ref,
                       *, n_heads, dh, scale, t):
    qi = pl.program_id(1)
    ki = pl.program_id(2)

    @pl.when(ki == 0)
    def _():
        m_ref[...] = jnp.full_like(m_ref, _MASK_VALUE)
        l_ref[...] = jnp.zeros_like(l_ref)
        acc_ref[...] = jnp.zeros_like(acc_ref)

    @pl.when(ki <= qi)                       # causal tile skip
    def _():
        q = q_ref[0]                         # (t, D)
        k = k_ref[0]
        v = v_ref[0]
        row = qi * t + jax.lax.broadcasted_iota(jnp.int32, (t, t), 0)
        col = ki * t + jax.lax.broadcasted_iota(jnp.int32, (t, t), 1)
        causal = col <= row                  # shared across heads
        for h in range(n_heads):
            sl = slice(h * dh, (h + 1) * dh)
            qh = (q[:, sl].astype(jnp.float32) * scale).astype(jnp.bfloat16)
            kh = k[:, sl].astype(jnp.bfloat16)
            s = jax.lax.dot_general(qh, kh, (((1,), (1,)), ((), ())),
                                    preferred_element_type=jnp.float32)
            s = jnp.where(causal, s, _MASK_VALUE)
            m_prev = m_ref[:, h:h + 1]
            l_prev = l_ref[:, h:h + 1]
            m_new = jnp.maximum(m_prev, jnp.max(s, axis=-1, keepdims=True))
            alpha = jnp.exp(m_prev - m_new)
            p = jnp.exp(s - m_new)
            l_ref[:, h:h + 1] = alpha * l_prev + jnp.sum(p, axis=-1, keepdims=True)
            pv = jnp.dot(p.astype(jnp.bfloat16), v[:, sl].astype(jnp.bfloat16),
                         preferred_element_type=jnp.float32)
            acc_ref[:, sl] = alpha * acc_ref[:, sl] + pv
            m_ref[:, h:h + 1] = m_new

    @pl.when(ki == pl.num_programs(2) - 1)
    def _():
        for h in range(n_heads):
            sl = slice(h * dh, (h + 1) * dh)
            inv = pl.reciprocal(l_ref[:, h:h + 1], approx=True)
            acc_ref[:, sl] = acc_ref[:, sl] * inv
        o_ref[0] = acc_ref[...].astype(o_ref.dtype)


def causal_attention(q, k, v, n_heads, *, tile=128):
    """q, k, v: (B, S, D) with head h packed in columns [h*Dh, (h+1)*Dh)."""
    B, S, D = q.shape
    dh = D // n_heads
    t = min(tile, _round_up(S, 8))
    S_pad = _round_up(S, t)
    if S_pad != S:
        pad = ((0, 0), (0, S_pad - S), (0, 0))
        q, k, v = jnp.pad(q, pad), jnp.pad(k, pad), jnp.pad(v, pad)
    nt = S_pad // t

    kernel = functools.partial(_flash_attn_kernel, n_heads=n_heads, dh=dh,
                               scale=1.0 / math.sqrt(dh), t=t)
    cost = pl.CostEstimate(
        flops=2 * B * S_pad * S_pad * D,                # ~causal half of 2 matmuls
        transcendentals=B * n_heads * S_pad * S_pad,
        bytes_accessed=4 * 4 * B * S_pad * D,
    )
    # kv block index is clamped to min(ki, qi): fully-masked (skipped) steps
    # re-use the previously fetched block, so no extra DMA is issued for them.
    out = pl.pallas_call(
        kernel,
        out_shape=jax.ShapeDtypeStruct((B, S_pad, D), q.dtype),
        grid_spec=pltpu.PrefetchScalarGridSpec(
            num_scalar_prefetch=0,
            grid=(B, nt, nt),
            in_specs=[
                pl.BlockSpec((1, t, D), lambda b, qi, ki: (b, qi, 0)),
                pl.BlockSpec((1, t, D), lambda b, qi, ki: (b, jnp.minimum(ki, qi), 0)),
                pl.BlockSpec((1, t, D), lambda b, qi, ki: (b, jnp.minimum(ki, qi), 0)),
            ],
            out_specs=pl.BlockSpec((1, t, D), lambda b, qi, ki: (b, qi, 0)),
            scratch_shapes=[
                pltpu.VMEM((t, D), jnp.float32),          # output accumulator (heads packed)
                pltpu.VMEM((t, n_heads), jnp.float32),    # running max m
                pltpu.VMEM((t, n_heads), jnp.float32),    # running denom l
            ],
        ),
        compiler_params=pltpu.CompilerParams(
            dimension_semantics=("parallel", "parallel", "arbitrary"),
            vmem_limit_bytes=_vmem_limit_bytes()),
        cost_estimate=cost,
    )(q, k, v)
    return out[:, :S, :]


def multi_head_attention(x, p, n_heads):
    """Fused LN1 -> QKV projection -> flash causal attention -> out-proj (+x)."""
    D = x.shape[-1]
    qkv = linear(x, p['wqkv'], p.get('bqkv'),
                 ln_scale=p['ln1_scale'], ln_shift=p['ln1_shift'])
    # TODO(synk): the q/k/v split is one extra XLA slice pass; a 3-output
    # projection kernel could avoid it but requires D % 128 == 0 tiling.
    q, k, v = qkv[..., :D], qkv[..., D:2 * D], qkv[..., 2 * D:]
    ctx = causal_attention(q, k, v, n_heads)
    # TODO(synk): attention-weight dropout omitted (eval-mode forward / drop_rate=0).
    return linear(ctx, p['wo'], p['bo'], residual=x)


# ---------------------------------------------------------------------------
# Full GPT forward
# ---------------------------------------------------------------------------
def gpt_forward(params, in_idx, cfg):
    B, S = in_idx.shape
    # TODO(synk): embedding gather uses jnp.take (plain XLA gather); dropout omitted.
    x = jnp.take(params['tok_emb'], in_idx, axis=0) + params['pos_emb'][:S][None]
    for p in params['blocks']:
        x = multi_head_attention(x, p, cfg['n_heads'])          # LN1 + attn + proj + residual
        x = feed_forward(x, p['ln2_scale'], p['ln2_shift'],
                         p['w1'], p['b1'], p['w2'], p['b2'])    # LN2 + FFN + residual
    # Final LayerNorm fused into the LM head matmul (no bias).
    return linear(x, params['out_w'],
                  ln_scale=params['fn_scale'], ln_shift=params['fn_shift'])


# ---------------------------------------------------------------------------
# Pure-JAX reference (mirrors the PyTorch module; matmul operands rounded to
# bf16 to match the kernels' MXU input precision, accumulation stays f32)
# ---------------------------------------------------------------------------
def _r(t):
    return t.astype(jnp.bfloat16).astype(jnp.float32)


def _ln_ref(x, scale, shift, eps=1e-5):
    mean = x.mean(-1, keepdims=True)
    var = ((x - mean) ** 2).mean(-1, keepdims=True)
    return scale * (x - mean) / jnp.sqrt(var + eps) + shift


def _gelu_ref(x):
    return 0.5 * x * (1.0 + jnp.tanh(jnp.sqrt(2.0 / jnp.pi) * (x + 0.044715 * x ** 3)))


def _mha_ref(x, p, n_heads):
    B, S, D = x.shape
    dh = D // n_heads
    h = _ln_ref(x, p['ln1_scale'], p['ln1_shift'])
    qkv = _r(h) @ _r(p['wqkv'])
    q, k, v = qkv[..., :D], qkv[..., D:2 * D], qkv[..., 2 * D:]

    def split(t):
        return t.reshape(B, S, n_heads, dh).transpose(0, 2, 1, 3)

    q, k, v = split(q), split(k), split(v)
    scores = jnp.einsum('bhqd,bhkd->bhqk', _r(q / math.sqrt(dh)), _r(k))
    mask = jnp.tril(jnp.ones((S, S), dtype=bool))
    scores = jnp.where(mask, scores, -jnp.inf)
    w = jax.nn.softmax(scores, axis=-1)
    ctx = jnp.einsum('bhqk,bhkd->bhqd', _r(w), _r(v))
    ctx = ctx.transpose(0, 2, 1, 3).reshape(B, S, D)
    return _r(ctx) @ _r(p['wo']) + p['bo'] + x


def gpt_reference(params, in_idx, cfg):
    x = params['tok_emb'][in_idx] + params['pos_emb'][:in_idx.shape[1]][None]
    for p in params['blocks']:
        x = _mha_ref(x, p, cfg['n_heads'])
        h = _ln_ref(x, p['ln2_scale'], p['ln2_shift'])
        x = x + (_r(_gelu_ref(_r(h) @ _r(p['w1']) + p['b1'])) @ _r(p['w2']) + p['b2'])
    x = _ln_ref(x, params['fn_scale'], params['fn_shift'])
    return _r(x) @ _r(params['out_w'])


# ---------------------------------------------------------------------------
# Deterministic parameter init
# ---------------------------------------------------------------------------
def init_params(cfg, key):
    D = cfg['emb_dim']
    Hd = 4 * D
    V = cfg['vocab_size']
    C = cfg['context_length']
    n_layers = cfg['n_layers']
    keys = jax.random.split(key, 3 + n_layers)
    params = {
        'tok_emb': 0.02 * jax.random.normal(keys[0], (V, D), jnp.float32),
        'pos_emb': 0.02 * jax.random.normal(keys[1], (C, D), jnp.float32),
        'out_w': (1.0 / math.sqrt(D)) * jax.random.normal(keys[2], (D, V), jnp.float32),
        'fn_scale': jnp.ones((D,), jnp.float32),
        'fn_shift': jnp.zeros((D,), jnp.float32),
        'blocks': [],
    }
    s = 1.0 / math.sqrt(D)
    for l in range(n_layers):
        bk = jax.random.split(keys[3 + l], 11)
        params['blocks'].append({
            'ln1_scale': 1.0 + 0.1 * jax.random.normal(bk[0], (D,), jnp.float32),
            'ln1_shift': 0.02 * jax.random.normal(bk[1], (D,), jnp.float32),
            'ln2_scale': 1.0 + 0.1 * jax.random.normal(bk[2], (D,), jnp.float32),
            'ln2_shift': 0.02 * jax.random.normal(bk[3], (D,), jnp.float32),
            'wqkv': s * jax.random.normal(bk[4], (D, 3 * D), jnp.float32),  # fused Q/K/V, qkv_bias=False
            'wo': s * jax.random.normal(bk[5], (D, D), jnp.float32),
            'bo': 0.02 * jax.random.normal(bk[6], (D,), jnp.float32),
            'w1': s * jax.random.normal(bk[7], (D, Hd), jnp.float32),
            'b1': 0.02 * jax.random.normal(bk[8], (Hd,), jnp.float32),
            'w2': (1.0 / math.sqrt(Hd)) * jax.random.normal(bk[9], (Hd, D), jnp.float32),
            'b2': 0.02 * jax.random.normal(bk[10], (D,), jnp.float32),
        })
    return params


if __name__ == "__main__":
    cfg = dict(vocab_size=64, context_length=16, emb_dim=32,
               n_heads=4, n_layers=2, drop_rate=0.0, qkv_bias=False)
    batch, seq = 2, 8

    key = jax.random.PRNGKey(0)
    kparams, kidx = jax.random.split(key)
    params = init_params(cfg, kparams)
    in_idx = jax.random.randint(kidx, (batch, seq), 0, cfg['vocab_size'])

    logits = gpt_forward(params, in_idx, cfg)
    logits = jax.block_until_ready(logits)

    ref = gpt_reference(params, in_idx, cfg)
    assert logits.shape == (batch, seq, cfg['vocab_size'])
    max_err = float(jnp.max(jnp.abs(logits - ref)))
    assert jnp.allclose(logits, ref, atol=3e-2, rtol=3e-2), \
        f"mismatch vs reference (max abs err {max_err})"
    print("KERNEL_OK")
</pallas_src>

<mosaic_0001>
module attributes {stable_mosaic.version = 11 : i64} {
  func.func @_linear_kernel(%arg0: i32, %arg1: i32, %arg2: memref<16x32xf32, #tpu.memory_space<vmem>>, %arg3: memref<1x32xf32, #tpu.memory_space<vmem>>, %arg4: memref<1x32xf32, #tpu.memory_space<vmem>>, %arg5: memref<32x128xf32, #tpu.memory_space<vmem>>, %arg6: memref<16x128xf32, #tpu.memory_space<vmem>>) attributes {dimension_semantics = [#tpu.dimension_semantics<parallel>, #tpu.dimension_semantics<parallel>], iteration_bounds = array<i64: 1, 1>, scalar_prefetch = 0 : i64, scratch_operands = 0 : i64, tpu.core_type = #tpu.core_type<tc>, window_params = [{transform_indices = @transform_0, window_bounds = array<i64: 16, 32>}, {pipeline_mode = #tpu.pipeline_mode<synchronous>, transform_indices = @transform_1, window_bounds = array<i64: 1, 32>}, {pipeline_mode = #tpu.pipeline_mode<synchronous>, transform_indices = @transform_2, window_bounds = array<i64: 1, 32>}, {transform_indices = @transform_3, window_bounds = array<i64: 32, 128>}, {transform_indices = @transform_4, window_bounds = array<i64: 16, 128>}]} {
    %c0 = arith.constant 0 : index
    %c0_0 = arith.constant 0 : index
    %0 = vector.load %arg2[%c0, %c0_0] : memref<16x32xf32, #tpu.memory_space<vmem>>, vector<16x32xf32>
    %cst = arith.constant dense<0.000000e+00> : vector<16xf32>
    %1 = vector.multi_reduction <add>, %0, %cst [1] : vector<16x32xf32> to vector<16xf32>
    %2 = vector.shape_cast %1 : vector<16xf32> to vector<16x1xf32>
    %cst_1 = arith.constant 3.200000e+01 : f32
    %3 = vector.broadcast %cst_1 : f32 to vector<16x1xf32>
    %4 = arith.divf %2, %3 : vector<16x1xf32>
    %5 = vector.broadcast %4 : vector<16x1xf32> to vector<16x32xf32>
    %6 = arith.subf %0, %5 : vector<16x32xf32>
    %7 = vector.broadcast %4 : vector<16x1xf32> to vector<16x32xf32>
    %8 = arith.subf %0, %7 : vector<16x32xf32>
    %9 = arith.mulf %6, %8 : vector<16x32xf32>
    %cst_2 = arith.constant dense<0.000000e+00> : vector<16xf32>
    %10 = vector.multi_reduction <add>, %9, %cst_2 [1] : vector<16x32xf32> to vector<16xf32>
    %11 = vector.shape_cast %10 : vector<16xf32> to vector<16x1xf32>
    %cst_3 = arith.constant 3.200000e+01 : f32
    %12 = vector.broadcast %cst_3 : f32 to vector<16x1xf32>
    %13 = arith.divf %11, %12 : vector<16x1xf32>
    %c0_4 = arith.constant 0 : index
    %c0_5 = arith.constant 0 : index
    %14 = vector.load %arg3[%c0_4, %c0_5] : memref<1x32xf32, #tpu.memory_space<vmem>>, vector<1x32xf32>
    %15 = vector.broadcast %4 : vector<16x1xf32> to vector<16x32xf32>
    %16 = arith.subf %0, %15 : vector<16x32xf32>
    %cst_6 = arith.constant 9.99999974E-6 : f32
    %17 = vector.broadcast %cst_6 : f32 to vector<16x1xf32>
    %18 = arith.addf %13, %17 : vector<16x1xf32>
    %19 = math.rsqrt %18 : vector<16x1xf32>
    %20 = vector.broadcast %19 : vector<16x1xf32> to vector<16x32xf32>
    %21 = arith.mulf %16, %20 : vector<16x32xf32>
    %22 = vector.broadcast %14 : vector<1x32xf32> to vector<16x32xf32>
    %23 = arith.mulf %22, %21 : vector<16x32xf32>
    %c0_7 = arith.constant 0 : index
    %c0_8 = arith.constant 0 : index
    %24 = vector.load %arg4[%c0_7, %c0_8] : memref<1x32xf32, #tpu.memory_space<vmem>>, vector<1x32xf32>
    %25 = vector.broadcast %24 : vector<1x32xf32> to vector<16x32xf32>
    %26 = arith.addf %23, %25 : vector<16x32xf32>
    %27 = arith.truncf %26 : vector<16x32xf32> to vector<16x32xbf16>
    %c0_9 = arith.constant 0 : index
    %c0_10 = arith.constant 0 : index
    %28 = vector.load %arg5[%c0_9, %c0_10] : memref<32x128xf32, #tpu.memory_space<vmem>>, vector<32x128xf32>
    %29 = arith.truncf %28 : vector<32x128xf32> to vector<32x128xbf16>
    %cst_11 = arith.constant dense<0.000000e+00> : vector<16x128xf32>
    %30 = tpu.matmul %27, %29, %cst_11 {dimension_numbers = #tpu.dot_dimension_numbers<[1], [0], [0], [1], [0, 0, 1, 1], [], []>} : vector<16x32xbf16>, vector<32x128xbf16>, vector<16x128xf32> -> vector<16x128xf32>
    %c0_12 = arith.constant 0 : index
    %c0_13 = arith.constant 0 : index
    %31 = vector.load %arg6[%c0_12, %c0_13] : memref<16x128xf32, #tpu.memory_space<vmem>>, vector<16x128xf32>
    tpu.vector_store %arg6[%c0_12, %c0_13], %30 {strides = array<i32>} : memref<16x128xf32, #tpu.memory_space<vmem>>, vector<16x128xf32>,
    return
  }
  func.func @transform_0(%arg0: i32, %arg1: i32) -> (i32, i32) {
    %c0_i32 = arith.constant 0 : i32
    %c0_i32_0 = arith.constant 0 : i32
    return %arg0, %c0_i32 : i32, i32
  }
  func.func @transform_1(%arg0: i32, %arg1: i32) -> (i32, i32) {
    %c0_i32 = arith.constant 0 : i32
    %c0_i32_0 = arith.constant 0 : i32
    %c0_i32_1 = arith.constant 0 : i32
    return %c0_i32, %c0_i32_0 : i32, i32
  }
  func.func @transform_2(%arg0: i32, %arg1: i32) -> (i32, i32) {
    %c0_i32 = arith.constant 0 : i32
    %c0_i32_0 = arith.constant 0 : i32
    %c0_i32_1 = arith.constant 0 : i32
    return %c0_i32, %c0_i32_0 : i32, i32
  }
  func.func @transform_3(%arg0: i32, %arg1: i32) -> (i32, i32) {
    %c0_i32 = arith.constant 0 : i32
    %c0_i32_0 = arith.constant 0 : i32
    return %c0_i32, %arg1 : i32, i32
  }
  func.func @transform_4(%arg0: i32, %arg1: i32) -> (i32, i32) {
    %c0_i32 = arith.constant 0 : i32
    return %arg0, %arg1 : i32, i32
  }
}

</mosaic_0001>

<bundles_post_ra>
// kernel: tpu_custom_call.1
= control target key start
LH: loop header
LB: loop body
LE: loop exit
PB: predicated region body
PF: predicated region fallthrough
CT: control target
= control target key end

     0   :  { %9 = vsyncpa [#allocation3], 0  ;;  %s355_s0 = inlined_call_operand.hbm [shape: f32[16,32], index: 0, kind: input, shape index: {}]   ;;  %s356_s1 = inlined_call_operand.hbm [shape: f32[1,32], index: 1, kind: input, shape index: {}]   ;;  %s357_s2 = inlined_call_operand.vmem [shape: f32[1,32], index: 2, kind: input, shape index: {}]   ;;  %s358_s3 = inlined_call_operand.hbm [shape: f32[32,128], index: 3, kind: input, shape index: {}]   ;;  %s359_s4 = inlined_call_operand.hbm [shape: f32[16,128], index: 4, kind: output, shape index: {}]  }
   0x1   :  { %10 = vsyncpa [#allocation6], 0  ;;  %s30_s17 = sshll.u32 %s356_s1, 4  ;;  %s31_s17 = int_to_ptr.hbm [resolvable:$true] %s30_s17 }
   0x2   :  { %11 = vsyncpa [#allocation4], 0  ;;  %s294_s18 = smov [#allocation5]   ;;  %s16_s22 = sshll.u32 %s355_s0, 4  ;;  %s17_s22 = int_to_ptr.hbm [resolvable:$true] %s16_s22 }
   0x3   :  { %s32_s19 = sshll.u32 %s294_s18, 4  ;;  %s295_s23 = smov [#allocation2]   ;;  %s33_s19 = int_to_ptr.vmem [resolvable:$true] %s32_s19 }
   0x4   :  { %35 = dma.hbm_to_vmem [thread:$0]  %s31_s17, 16, %s33_s19, [#allocation6]  }
   0x5   :  { %s18_s24 = sshll.u32 %s295_s23, 4  ;;  %s296_s25 = smov 128   ;;  %s19_s24 = int_to_ptr.vmem [resolvable:$true] %s18_s24 }
   0x6   :  { %s297_s26 = smov 8   ;;  %s42_s28 = sshll.u32 %s358_s3, 4  ;;  %s43_s28 = int_to_ptr.hbm [resolvable:$true] %s42_s28 }
   0x7   :  { %24 = dma.hbm_to_vmem [thread:$0]  %s17_s22, 256, %s19_s24, [#allocation3], %s296_s25, %s296_s25, %s297_s26  }
   0x8   :  { %s298_s29 = smov [#allocation7]  }
   0x9   :  { %s44_s30 = sshll.u32 %s298_s29, 4  ;;  %s45_s30 = int_to_ptr.vmem [resolvable:$true] %s44_s30 }
   0xa   :  { %50 = dma.hbm_to_vmem [thread:$0]  %s43_s28, 512, %s45_s30, [#allocation6], %s296_s25, %s296_s25, %s297_s26  }
   0xb   :  { %288 = dma.done.wait [#allocation3], 256  }
   0xc   :  { %289 = vsyncadd [#allocation3], 4294967040 }
   0xd   :  { %290 = dma.done.wait [#allocation6], 528  }
   0xe   :  { %291 = vsyncadd [#allocation6], 4294966768  ;;  %vm66_vm0 = vcmask 261120   ;;  %v64_v0 = vld [vmem:[#allocation2] sm:$0xff]  ;;  %v65_v2 = vld [vmem:[#allocation2 + $0x8] sm:$0xff]  ;;  %v299_v4 = vmov 32.0  }
   0xf   :  { %v67_v1 = vsel %vm66_vm0, %v64_v0, 0.0  ;;  %v70_v3 = vsel %vm66_vm0, %v65_v2, 0.0  ;;  %186 = vrcp.f32 %v299_v4  ;;  %v133_v21 = vld [vmem:[#allocation7 + $0x10] sm:$0xff]  ;;  %v134_v22 = vld [vmem:[#allocation7 + $0x18] sm:$0xff]  ;;  %v131_v24 = vld [vmem:[#allocation7] sm:$0xff]  ;;  %s300_s5 = smov [#allocation8]  }
  0x10   :  { %68 = vadd.xlane.f32.xlu0 %v67_v1  ;;  %v136_v23 = vpack.c.bf16 %v134_v22, %v133_v21  ;;  %v132_v25 = vld [vmem:[#allocation7 + $0x8] sm:$0xff]  ;;  %v184_v46 = vld [vmem:[#allocation5] ss:$0 sm:$0xff]  ;;  %s160_s6 = sshll.u32 %s300_s5, 4  ;;  %s162_s9 = sshll.u32 %s359_s4, 4  ;;  %s161_s6 = int_to_ptr.vmem [resolvable:$true] %s160_s6  ;;  %s163_s9 = int_to_ptr.hbm [resolvable:$true] %s162_s9 }
  0x11   :  { %v135_v27 = vpack.c.bf16 %v132_v25, %v131_v24  ;;  %v185_v51 = vld [vmem:[%s357_s2] ss:$0 sm:$0xff] }
  0x12   :  { %146 = vmatpush.bf16.msra.mxu0 %v136_v23 }
  0x15   :  { %v187_v5 = vpop.eup %186 }
  0x16   :  { %v74_v6 = vmul.f32 32.0, %v187_v5  ;;  %vm78_vm1 = vweird.f32 %v187_v5  ;;  %147 = vmatpush.bf16.msra.mxu0 %v135_v27 }
  0x18   :  { %71 = vadd.xlane.f32.xlu0 %v70_v3  ;;  %v75_v7 = vsub.f32 1.0, %v74_v6 }
  0x1a   :  { %v76_v8 = vmul.f32 %v187_v5, %v75_v7 }
  0x1c   :  { %v77_v9 = vadd.f32 %v187_v5, %v76_v8 }
  0x1e   :  { %v79_v10 = vsel %vm78_vm1, %v187_v5, %v77_v9 }
  0x83   :  { %v69_v11 = vpop.xlane.xlu0 %68 }
  0x84   :  { %v80_v12 = vmul.f32 %v79_v10, %v69_v11 }
  0x86   :  { %v82_v13 = vsub.f32 %v64_v0, %v80_v12 }
  0x88   :  { %v84_v14 = vmul.f32 %v82_v13, %v82_v13 }
  0x8a   :  { %v86_v15 = vsel %vm66_vm0, %v84_v14, 0.0 }
  0x8b   :  { %87 = vadd.xlane.f32.xlu1 %v86_v15  ;;  %v72_v16 = vpop.xlane.xlu0 %71 }
  0x8c   :  { %v81_v17 = vmul.f32 %v79_v10, %v72_v16 }
  0x8e   :  { %v83_v18 = vsub.f32 %v65_v2, %v81_v17 }
  0x90   :  { %v85_v19 = vmul.f32 %v83_v18, %v83_v18 }
  0x92   :  { %v89_v20 = vsel %vm66_vm0, %v85_v19, 0.0 }
  0x93   :  { %90 = vadd.xlane.f32.xlu1 %v89_v20 }
  0xfe   :  { %v88_v26 = vpop.xlane.xlu1 %87 }
  0xff   :  { %v92_v28 = vmul.f32 %v88_v26, %v79_v10 }
 0x101   :  { %v95_v29 = vadd.f32 1e-05, %v92_v28 }
 0x103   :  { %188 = vrsqrt.f32 %v95_v29  ;;  %vm103_vm3 = vweird.f32 %v95_v29 }
 0x106   :  { %v91_v30 = vpop.xlane.xlu1 %90 }
 0x107   :  { %v93_v31 = vmul.f32 %v91_v30, %v79_v10 }
 0x109   :  { %v189_v32 = vpop.eup %188  ;;  %v96_v33 = vadd.f32 1e-05, %v93_v31 }
 0x10a   :  { %v98_v34 = vmul.f32 %v189_v32, %v95_v29  ;;  %vm104_vm2 = vweird.f32 %v189_v32 }
 0x10b   :  { %190 = vrsqrt.f32 %v96_v33  ;;  %vm105_vm4 = vmor %vm103_vm3, %vm104_vm2  ;;  %vm113_vm6 = vweird.f32 %v96_v33 }
 0x10c   :  { %v99_v35 = vmul.f32 %v189_v32, %v98_v34 }
 0x10e   :  { %v100_v36 = vmul.f32 0.5, %v99_v35 }
 0x110   :  { %v101_v37 = vsub.f32 1.5, %v100_v36 }
 0x111   :  { %v191_v38 = vpop.eup %190 }
 0x112   :  { %v102_v39 = vmul.f32 %v189_v32, %v101_v37  ;;  %v108_v40 = vmul.f32 %v191_v38, %v96_v33  ;;  %vm114_vm5 = vweird.f32 %v191_v38 }
 0x113   :  { %vm115_vm7 = vmor %vm113_vm6, %vm114_vm5 }
 0x114   :  { %v109_v41 = vmul.f32 %v191_v38, %v108_v40  ;;  %v106_v42 = vsel %vm105_vm4, %v189_v32, %v102_v39 }
 0x115   :  { %v117_v45 = vmul.f32 %v106_v42, %v82_v13 }
 0x116   :  { %v110_v43 = vmul.f32 0.5, %v109_v41 }
 0x117   :  { %v122_v50 = vmul.f32 %v184_v46, %v117_v45 }
 0x118   :  { %v111_v44 = vsub.f32 1.5, %v110_v43 }
 0x119   :  { %v128_v53 = vadd.f32 %v185_v51, %v122_v50 }
 0x11a   :  { %v112_v47 = vmul.f32 %v191_v38, %v111_v44 }
 0x11c   :  { %v116_v48 = vsel %vm115_vm7, %v191_v38, %v112_v47 }
 0x11d   :  { %v118_v49 = vmul.f32 %v116_v48, %v83_v18 }
 0x11f   :  { %v123_v52 = vmul.f32 %v184_v46, %v118_v49 }
 0x121   :  { %v129_v54 = vadd.f32 %v185_v51, %v123_v52 }
 0x123   :  { %v130_v55 = vpack.c.bf16 %v129_v54, %v128_v53 }
 0x125   :  { %176 = vmatmul.msk.bf16.vlgmr.msra.gmra.mxu0 %vm66_vm0, %v130_v55 }
 0x1a2   :  { %v149_v56 = vpop.f32.mrf.mxu0 }
 0x1a3   :  { %154 = vst [vmem:[#allocation8] sm:$0xff] %v149_v56 }
 0x1aa   :  { %v151_v57 = vpop.f32.mrf.mxu0 }
 0x1ab   :  { %155 = vst [vmem:[#allocation8 + $0x8] sm:$0xff] %v151_v57 }
 0x1ac   :  { %168 = dma.vmem_to_hbm [thread:$0]  %s161_s6, 256, %s163_s9, [#allocation4], %s296_s25, %s296_s25, %s297_s26  }
 0x1ad   :  { %292 = dma.done.wait [#allocation4], 256  }
 0x1ae   :  { %293 = vsyncadd [#allocation4], 4294967040 }
 0x1af   :  { %173 = vsyncpa [#allocation3], 1 }
 0x1b0   :  { %174 = vsyncpa [#allocation6], 1 }
 0x1b1   :  { %175 = vsyncpa [#allocation4], 1 }

</bundles_post_ra>
